<compile_context>
chip_gen: v5e
topology: v5e:2x2
jax: 0.10.0
libtpu: 0.0.40
codegen_flags: <defaults>
</compile_context>

<pallas_src>
import functools

import jax
import jax.numpy as jnp
from jax.experimental import pallas as pl
from jax.experimental.pallas import tpu as pltpu

_LANES = 128
_SUBLANES = 8
# ~8 MiB per output buffer (16 MiB double-buffered): per-grid-step overhead
# (~0.35 us) becomes <5% of writeback time even at v7x's ~3.2 TB/s HBM, and it
# still fits every generation once the scoped-VMEM limit is raised to 32 MiB
# (v5e's default is only 16 MiB).
_TARGET_TILE_BYTES = 8 << 20
_MAX_SLAB_TILE_ROWS = _TARGET_TILE_BYTES // (_LANES * 4)   # 16384 rows x 128 lanes
# Below this many output elements an XLA broadcast beats a pallas_call launch
# (and can fuse into downstream consumers).
_MIN_PALLAS_ELEMS = 2048

_COMPILER_PARAMS = pltpu.CompilerParams(
    dimension_semantics=("parallel",),      # shard row-tiles across v7x's 2 TCs
    vmem_limit_bytes=32 << 20,              # 2 x 8 MiB output buffers everywhere
)


def _zero_fill_kernel(zero_ref, o_ref):
    # zero_ref: SMEM (1,) scalar parameter; o_ref: VMEM output tile.
    # Scalar fill keeps torch semantics (zeros * zero): NaN/Inf in the
    # parameter still propagate, with no per-vreg VALU multiply.
    fill = jnp.float32(0.0) * zero_ref[0]
    o_ref[...] = jnp.full(o_ref.shape, fill, dtype=o_ref.dtype)


def _pick_rows(extent, max_rows):
    """Rows per block: a multiple of 8 (or the full extent), <= max_rows, and,
    when it costs nothing, small enough that the grid has >= 2 blocks so both
    v7x TensorCores issue writeback DMAs."""
    max_rows = max(_SUBLANES, (max_rows // _SUBLANES) * _SUBLANES)
    if extent > max_rows:
        return max_rows                                   # grid >= 2 anyway
    half = -(-extent // 2)
    half = -(-half // _SUBLANES) * _SUBLANES              # round up to 8
    if half < extent:
        return half                                       # two blocks
    return extent                                         # one full-extent block


def _zero_fill_impl(zp, n, outdim):
    """(n, outdim) float32 filled with 0.0 * zp[0]."""
    total = n * outdim
    fill = jnp.zeros((), jnp.float32) * zp[0]

    # Tiny / empty outputs: XLA broadcast is cheaper than a kernel launch and
    # fuses downstream.  Also avoids degenerate grids when n or outdim is 0.
    if total <= _MIN_PALLAS_ELEMS:
        return jnp.broadcast_to(fill, (n, outdim))

    if outdim % _LANES == 0:
        # Lane-dense direct path: every store is a full-width vst and the
        # output needs no reshape / relayout afterwards.
        max_rows = _TARGET_TILE_BYTES // (outdim * 4)
        tile_n = _pick_rows(n, max_rows)
        return pl.pallas_call(
            _zero_fill_kernel,
            out_shape=jax.ShapeDtypeStruct((n, outdim), jnp.float32),
            grid=(pl.cdiv(n, tile_n),),
            in_specs=[pl.BlockSpec(memory_space=pltpu.SMEM)],  # scalar param only
            out_specs=pl.BlockSpec((tile_n, outdim), lambda i: (i, 0)),
            compiler_params=_COMPILER_PARAMS,
        )(zp)

    # outdim not a multiple of 128: fill a lane-dense [ceil(total/128), 128]
    # slab (only the final block's tail is masked), then slice/reshape in XLA.
    pad_rows = pl.cdiv(total, _LANES)
    tile_rows = _pick_rows(pad_rows, _MAX_SLAB_TILE_ROWS)
    slab = pl.pallas_call(
        _zero_fill_kernel,
        out_shape=jax.ShapeDtypeStruct((pad_rows, _LANES), jnp.float32),
        grid=(pl.cdiv(pad_rows, tile_rows),),
        in_specs=[pl.BlockSpec(memory_space=pltpu.SMEM)],
        out_specs=pl.BlockSpec((tile_rows, _LANES), lambda i: (i, 0)),
        compiler_params=_COMPILER_PARAMS,
    )(zp)
    flat = slab.reshape(-1)
    if pad_rows * _LANES != total:
        flat = flat[:total]
    return flat.reshape(n, outdim)


@functools.partial(jax.custom_vjp, nondiff_argnums=(1, 2))
def _zero_fill(zp, n, outdim):
    return _zero_fill_impl(zp, n, outdim)


def _zero_fill_fwd(zp, n, outdim):
    return _zero_fill_impl(zp, n, outdim), zp


def _zero_fill_bwd(n, outdim, zp, g):
    # d/dz of (zeros * z) is zero everywhere -> zero cotangent, matching torch.
    del n, outdim, g
    return (jnp.zeros_like(zp),)


_zero_fill.defvjp(_zero_fill_fwd, _zero_fill_bwd)


def zero_forward(x, edge_index, zero_param, outdim):
    """Pallas equivalent of Zero.forward(x, edge_index)."""
    del edge_index                      # unused, exactly like the PyTorch module
    n = int(x.shape[0])                 # only the static row count of x is used
    zp = jnp.asarray(zero_param, jnp.float32).reshape((1,))
    return _zero_fill(zp, n, int(outdim))


if __name__ == "__main__":
    key = jax.random.PRNGKey(0)
    kx, ke = jax.random.split(key)

    # Parameter matching nn.Parameter(torch.tensor(0.0)).
    zero_param = jnp.zeros((), dtype=jnp.float32)

    indim, E = 16, 24

    # Case 1: module-sized tiny example (short-circuits to an XLA broadcast).
    n1, outdim1 = 8, 32
    x1 = jax.random.normal(kx, (n1, indim), dtype=jnp.float32)
    edge_index = jax.random.randint(ke, (2, E), 0, n1, dtype=jnp.int32)
    out1 = jax.block_until_ready(zero_forward(x1, edge_index, zero_param, outdim1))
    assert out1.shape == (n1, outdim1) and out1.dtype == jnp.float32
    assert bool(jnp.all(out1 == 0.0))

    # Case 2: lane-dense direct Pallas path (outdim % 128 == 0, grid of 2).
    n2, outdim2 = 1024, 256
    x2 = jax.random.normal(kx, (n2, indim), dtype=jnp.float32)
    out2 = jax.block_until_ready(zero_forward(x2, edge_index, zero_param, outdim2))
    assert out2.shape == (n2, outdim2) and out2.dtype == jnp.float32
    assert bool(jnp.all(out2 == 0.0))

    # Case 3: padded-slab Pallas fallback (outdim not a multiple of 128).
    n3, outdim3 = 33, 96
    x3 = jax.random.normal(kx, (n3, indim), dtype=jnp.float32)
    out3 = jax.block_until_ready(zero_forward(x3, edge_index, zero_param, outdim3))
    assert out3.shape == (n3, outdim3) and out3.dtype == jnp.float32
    assert bool(jnp.all(out3 == 0.0))

    # Gradient w.r.t. the parameter flows (and is zero), like the PyTorch module.
    grad = jax.grad(
        lambda z: jnp.sum(zero_forward(x2, edge_index, z, outdim2)))(zero_param)
    grad = jax.block_until_ready(grad)
    assert bool(jnp.all(grad == 0.0))

    print("KERNEL_OK")
</pallas_src>

<mosaic_0001>
module attributes {stable_mosaic.version = 11 : i64} {
  func.func @_zero_fill_kernel(%arg0: i32, %arg1: memref<1xf32, #tpu.memory_space<smem>>, %arg2: memref<512x256xf32, #tpu.memory_space<vmem>>) attributes {dimension_semantics = [#tpu.dimension_semantics<parallel>], iteration_bounds = array<i64: 2>, scalar_prefetch = 0 : i64, scratch_operands = 0 : i64, tpu.core_type = #tpu.core_type<tc>, window_params = [{transform_indices = @transform_0, window_bounds = array<i64: 1>}, {transform_indices = @transform_1, window_bounds = array<i64: 512, 256>}]} {
    %c0 = arith.constant 0 : index
    %0 = memref.load %arg1[%c0] : memref<1xf32, #tpu.memory_space<smem>>
    %cst = arith.constant 0.000000e+00 : f32
    %1 = arith.mulf %cst, %0 : f32
    %2 = vector.broadcast %1 : f32 to vector<512x256xf32>
    %c0_0 = arith.constant 0 : index
    %c0_1 = arith.constant 0 : index
    %3 = vector.load %arg2[%c0_0, %c0_1] : memref<512x256xf32, #tpu.memory_space<vmem>>, vector<512x256xf32>
    tpu.vector_store %arg2[%c0_0, %c0_1], %2 {strides = array<i32>} : memref<512x256xf32, #tpu.memory_space<vmem>>, vector<512x256xf32>,
    return
  }
  func.func @transform_0(%arg0: i32) -> i32 {
    %c0_i32 = arith.constant 0 : i32
    %c0_i32_0 = arith.constant 0 : i32
    return %c0_i32 : i32
  }
  func.func @transform_1(%arg0: i32) -> (i32, i32) {
    %c0_i32 = arith.constant 0 : i32
    %c0_i32_0 = arith.constant 0 : i32
    return %arg0, %c0_i32 : i32, i32
  }
}

</mosaic_0001>

<bundles_post_ra>
// kernel: tpu_custom_call.1
= control target key start
LH: loop header
LB: loop body
LE: loop exit
PB: predicated region body
PF: predicated region fallthrough
CT: control target
= control target key end

     0   :  { %s775_s0 = inlined_call_operand.<no memory space> [shape: f32[1], index: 0, kind: input, shape index: {}]   ;;  %s776_s1 = inlined_call_operand.hbm [shape: f32[1024,256], index: 1, kind: output, shape index: {}]  }
   0x1   :  { %6 = sst [smem:[#allocation2]] %s775_s0 }
   0x2   :  { %7 = vsyncpa [#allocation4], 0 }
   0x3   :  { %9 = vsyncpa [#allocation4 + $0x1], 0  ;;  %s427_s8 = smov 0   ;;  %s429_s9 = smov 0  }
   0x4   :  { %s431_s10 = smov 0   ;;  %s433_s11 = smov 0  }
   0x5 LB: > { %s294_s0 = sadd.s32 4294967295, %s410_s11   ;;  %s295_s12 = sadd.s32 4294967294, %s410_s11   ;;  %s410_s11 = sphi %s433_s11, %s782_s11   ;;  %s406_s10 = sphi %s431_s10, %s781_s10   ;;  %s402_s9 = sphi %s429_s9, %s780_s9   ;;  %s398_s8 = sphi %s427_s8, %s779_s8  }
   0x6   : > { %s450_s13 = sadd.s32 1, %s410_s11   ;;  %s43_s14 = sadd.s32 1, %s406_s10 }
   0x7   : > { %s40_s15 = ssub.s32 %s410_s11, %s450_s13  ;;  %p53_p0 = scmp.ne.s32.totalorder %s406_s10, %s402_s9 }
   0x8   : > { %p41_p1 = scmp.eq.s32.totalorder %s40_s15, 0  ;;  %p54_p2 = scmp.eq.s32.totalorder %s294_s0, 1 }
   0x9   : > { %p59_p3 = scmp.ne.s32.totalorder %s402_s9, %s398_s8  ;;  %p60_p4 = scmp.eq.s32.totalorder %s295_s12, 1 }
   0xa   : > { %s462_s16 = scalar_select %p41_p1, %s406_s10, %s43_s14  }
   0xb   : > { %p464_p5 = por %p54_p2, %p53_p0  ;;  %p468_p6 = por %p60_p4, %p59_p3 }
   0xc   : > { %p297_p7 = scmp.ge.s32.totalorder %s410_s11, 1  ;;  %p81_p8 = scmp.lt.s32.totalorder %s410_s11, 3 }
   0xe   : > { %p82_p9 = pnand %p297_p7, %p81_p8 }
   0xf   : > { %s93_s19 = sand.u32 (!%p82_p9), 1, %s402_s9   ;;  %s97_s20 = sld [smem:[#allocation2]] (!%p82_p9) }
  0x10   : > { %85 = sbr.rel (%p82_p9) target bundleno = 155 (0x9b), region = 24  ;;  %s298_s21 = sshll.u32 (!%p82_p9), %s93_s19, 10 }
  0x11   : > { %s479_s23 = scalar_lea.vmem (!%p82_p9), [#allocation3], %s298_s21  ;;  %s306_s24 = sshll.u32 (!%p82_p9), %s294_s0, 10 }
  0x12   : > { %s241_s27 = scalar_lea.hbm (!%p82_p9), %s776_s1, %s306_s24  ;;  %s242_s28 = sshll.u32 (!%p82_p9), %s479_s23, 4  ;;  %s243_s28 = int_to_ptr.vmem [resolvable:$true] %s242_s28 }
  0x13   : > { %s731_s29 = sshll.u32 (!%p82_p9), %s241_s27, 4  ;;  %s229_s30 = scalar_lea.sflag (!%p82_p9), [#allocation4], %s93_s19  ;;  %s245_s29 = int_to_ptr.hbm [resolvable:$true] %s731_s29 }
  0x14   : > { %s362_s2 = sshra.s32 (!%p82_p9), %s245_s29, 4  ;;  %s368_s6 = scalar_lea.hbm (!%p82_p9), %s776_s1, 2048  ;;  %s363_s2 = int_to_ptr.hbm [resolvable:$true] %s362_s2 }
  0x15   : > { %s98_s22 = smul.f32 0.0, %s97_s20  ;;  %s364_s3 = scalar_lea.hbm %s363_s2, 1024 }
  0x16   : > { %p365_p10 = scmp.ne.s32.totalorder %s363_s2, %s364_s3  ;;  %p369_p13 = scmp.lt.s32.totalorder %s363_s2, %s776_s1 }
  0x17   : > { %v477_v0 = vstv %s98_s22  ;;  %p370_p0 = scmp.lt.s32.totalorder %s368_s6, %s364_s3 }
  0x18   : > { %100 = vst [vmem:[%s479_s23] sm:$0xff] %v477_v0  ;;  %p366_p11 = pnand %p365_p10, %p464_p5 }
  0x19   : > { %101 = vst [vmem:[%s479_s23 + $0x8] sm:$0xff] %v477_v0  ;;  %p371_p1 = por %p370_p0, %p369_p13 }
  0x1a   : > { %102 = vst [vmem:[%s479_s23 + $0x10] sm:$0xff] %v477_v0  ;;  %p367_p12 = pneg %p366_p11 }
  0x1b   : > { %103 = vst [vmem:[%s479_s23 + $0x18] sm:$0xff] %v477_v0 }
  0x1c   : > { %104 = vst [vmem:[%s479_s23 + $0x20] sm:$0xff] %v477_v0  ;;  %p372_p2 = pnand %p371_p1, %p367_p12 }
  0x1d   : > { %105 = vst [vmem:[%s479_s23 + $0x28] sm:$0xff] %v477_v0 }
  0x1e   : > { %106 = vst [vmem:[%s479_s23 + $0x30] sm:$0xff] %v477_v0 }
  0x1f   : > { %107 = vst [vmem:[%s479_s23 + $0x38] sm:$0xff] %v477_v0 }
  0x20   : > { %108 = vst [vmem:[%s479_s23 + $0x40] sm:$0xff] %v477_v0 }
  0x21   : > { %109 = vst [vmem:[%s479_s23 + $0x48] sm:$0xff] %v477_v0 }
  0x22   : > { %110 = vst [vmem:[%s479_s23 + $0x50] sm:$0xff] %v477_v0 }
  0x23   : > { %111 = vst [vmem:[%s479_s23 + $0x58] sm:$0xff] %v477_v0 }
  0x24   : > { %112 = vst [vmem:[%s479_s23 + $0x60] sm:$0xff] %v477_v0 }
  0x25   : > { %113 = vst [vmem:[%s479_s23 + $0x68] sm:$0xff] %v477_v0 }
  0x26   : > { %114 = vst [vmem:[%s479_s23 + $0x70] sm:$0xff] %v477_v0 }
  0x27   : > { %115 = vst [vmem:[%s479_s23 + $0x78] sm:$0xff] %v477_v0 }
  0x28   : > { %116 = vst [vmem:[%s479_s23 + $0x80] sm:$0xff] %v477_v0 }
  0x29   : > { %117 = vst [vmem:[%s479_s23 + $0x88] sm:$0xff] %v477_v0 }
  0x2a   : > { %118 = vst [vmem:[%s479_s23 + $0x90] sm:$0xff] %v477_v0 }
  0x2b   : > { %119 = vst [vmem:[%s479_s23 + $0x98] sm:$0xff] %v477_v0 }
  0x2c   : > { %120 = vst [vmem:[%s479_s23 + $0xa0] sm:$0xff] %v477_v0 }
  0x2d   : > { %121 = vst [vmem:[%s479_s23 + $0xa8] sm:$0xff] %v477_v0 }
  0x2e   : > { %122 = vst [vmem:[%s479_s23 + $0xb0] sm:$0xff] %v477_v0 }
  0x2f   : > { %123 = vst [vmem:[%s479_s23 + $0xb8] sm:$0xff] %v477_v0 }
  0x30   : > { %124 = vst [vmem:[%s479_s23 + $0xc0] sm:$0xff] %v477_v0 }
  0x31   : > { %125 = vst [vmem:[%s479_s23 + $0xc8] sm:$0xff] %v477_v0 }
  0x32   : > { %126 = vst [vmem:[%s479_s23 + $0xd0] sm:$0xff] %v477_v0 }
  0x33   : > { %127 = vst [vmem:[%s479_s23 + $0xd8] sm:$0xff] %v477_v0 }
  0x34   : > { %128 = vst [vmem:[%s479_s23 + $0xe0] sm:$0xff] %v477_v0 }
  0x35   : > { %129 = vst [vmem:[%s479_s23 + $0xe8] sm:$0xff] %v477_v0 }
  0x36   : > { %130 = vst [vmem:[%s479_s23 + $0xf0] sm:$0xff] %v477_v0 }
  0x37   : > { %131 = vst [vmem:[%s479_s23 + $0xf8] sm:$0xff] %v477_v0 }
  0x38   : > { %132 = vst [vmem:[%s479_s23 + $0x100] sm:$0xff] %v477_v0 }
  0x39   : > { %133 = vst [vmem:[%s479_s23 + $0x108] sm:$0xff] %v477_v0 }
  0x3a   : > { %134 = vst [vmem:[%s479_s23 + $0x110] sm:$0xff] %v477_v0 }
  0x3b   : > { %135 = vst [vmem:[%s479_s23 + $0x118] sm:$0xff] %v477_v0 }
  0x3c   : > { %136 = vst [vmem:[%s479_s23 + $0x120] sm:$0xff] %v477_v0 }
  0x3d   : > { %137 = vst [vmem:[%s479_s23 + $0x128] sm:$0xff] %v477_v0 }
  0x3e   : > { %138 = vst [vmem:[%s479_s23 + $0x130] sm:$0xff] %v477_v0 }
  0x3f   : > { %139 = vst [vmem:[%s479_s23 + $0x138] sm:$0xff] %v477_v0 }
  0x40   : > { %140 = vst [vmem:[%s479_s23 + $0x140] sm:$0xff] %v477_v0 }
  0x41   : > { %141 = vst [vmem:[%s479_s23 + $0x148] sm:$0xff] %v477_v0 }
  0x42   : > { %142 = vst [vmem:[%s479_s23 + $0x150] sm:$0xff] %v477_v0 }
  0x43   : > { %143 = vst [vmem:[%s479_s23 + $0x158] sm:$0xff] %v477_v0 }
  0x44   : > { %144 = vst [vmem:[%s479_s23 + $0x160] sm:$0xff] %v477_v0 }
  0x45   : > { %145 = vst [vmem:[%s479_s23 + $0x168] sm:$0xff] %v477_v0 }
  0x46   : > { %146 = vst [vmem:[%s479_s23 + $0x170] sm:$0xff] %v477_v0 }
  0x47   : > { %147 = vst [vmem:[%s479_s23 + $0x178] sm:$0xff] %v477_v0 }
  0x48   : > { %148 = vst [vmem:[%s479_s23 + $0x180] sm:$0xff] %v477_v0 }
  0x49   : > { %149 = vst [vmem:[%s479_s23 + $0x188] sm:$0xff] %v477_v0 }
  0x4a   : > { %150 = vst [vmem:[%s479_s23 + $0x190] sm:$0xff] %v477_v0 }
  0x4b   : > { %151 = vst [vmem:[%s479_s23 + $0x198] sm:$0xff] %v477_v0 }
  0x4c   : > { %152 = vst [vmem:[%s479_s23 + $0x1a0] sm:$0xff] %v477_v0 }
  0x4d   : > { %153 = vst [vmem:[%s479_s23 + $0x1a8] sm:$0xff] %v477_v0 }
  0x4e   : > { %154 = vst [vmem:[%s479_s23 + $0x1b0] sm:$0xff] %v477_v0 }
  0x4f   : > { %155 = vst [vmem:[%s479_s23 + $0x1b8] sm:$0xff] %v477_v0 }
  0x50   : > { %156 = vst [vmem:[%s479_s23 + $0x1c0] sm:$0xff] %v477_v0 }
  0x51   : > { %157 = vst [vmem:[%s479_s23 + $0x1c8] sm:$0xff] %v477_v0 }
  0x52   : > { %158 = vst [vmem:[%s479_s23 + $0x1d0] sm:$0xff] %v477_v0 }
  0x53   : > { %159 = vst [vmem:[%s479_s23 + $0x1d8] sm:$0xff] %v477_v0 }
  0x54   : > { %160 = vst [vmem:[%s479_s23 + $0x1e0] sm:$0xff] %v477_v0 }
  0x55   : > { %161 = vst [vmem:[%s479_s23 + $0x1e8] sm:$0xff] %v477_v0 }
  0x56   : > { %162 = vst [vmem:[%s479_s23 + $0x1f0] sm:$0xff] %v477_v0 }
  0x57   : > { %163 = vst [vmem:[%s479_s23 + $0x1f8] sm:$0xff] %v477_v0 }
  0x58   : > { %164 = vst [vmem:[%s479_s23 + $0x200] sm:$0xff] %v477_v0 }
  0x59   : > { %165 = vst [vmem:[%s479_s23 + $0x208] sm:$0xff] %v477_v0 }
  0x5a   : > { %166 = vst [vmem:[%s479_s23 + $0x210] sm:$0xff] %v477_v0 }
  0x5b   : > { %167 = vst [vmem:[%s479_s23 + $0x218] sm:$0xff] %v477_v0 }
  0x5c   : > { %168 = vst [vmem:[%s479_s23 + $0x220] sm:$0xff] %v477_v0 }
  0x5d   : > { %169 = vst [vmem:[%s479_s23 + $0x228] sm:$0xff] %v477_v0 }
  0x5e   : > { %170 = vst [vmem:[%s479_s23 + $0x230] sm:$0xff] %v477_v0 }
  0x5f   : > { %171 = vst [vmem:[%s479_s23 + $0x238] sm:$0xff] %v477_v0 }
  0x60   : > { %172 = vst [vmem:[%s479_s23 + $0x240] sm:$0xff] %v477_v0 }
  0x61   : > { %173 = vst [vmem:[%s479_s23 + $0x248] sm:$0xff] %v477_v0 }
  0x62   : > { %174 = vst [vmem:[%s479_s23 + $0x250] sm:$0xff] %v477_v0 }
  0x63   : > { %175 = vst [vmem:[%s479_s23 + $0x258] sm:$0xff] %v477_v0 }
  0x64   : > { %176 = vst [vmem:[%s479_s23 + $0x260] sm:$0xff] %v477_v0 }
  0x65   : > { %177 = vst [vmem:[%s479_s23 + $0x268] sm:$0xff] %v477_v0 }
  0x66   : > { %178 = vst [vmem:[%s479_s23 + $0x270] sm:$0xff] %v477_v0 }
  0x67   : > { %179 = vst [vmem:[%s479_s23 + $0x278] sm:$0xff] %v477_v0 }
  0x68   : > { %180 = vst [vmem:[%s479_s23 + $0x280] sm:$0xff] %v477_v0 }
  0x69   : > { %181 = vst [vmem:[%s479_s23 + $0x288] sm:$0xff] %v477_v0 }
  0x6a   : > { %182 = vst [vmem:[%s479_s23 + $0x290] sm:$0xff] %v477_v0 }
  0x6b   : > { %183 = vst [vmem:[%s479_s23 + $0x298] sm:$0xff] %v477_v0 }
  0x6c   : > { %184 = vst [vmem:[%s479_s23 + $0x2a0] sm:$0xff] %v477_v0 }
  0x6d   : > { %185 = vst [vmem:[%s479_s23 + $0x2a8] sm:$0xff] %v477_v0 }
  0x6e   : > { %186 = vst [vmem:[%s479_s23 + $0x2b0] sm:$0xff] %v477_v0 }
  0x6f   : > { %187 = vst [vmem:[%s479_s23 + $0x2b8] sm:$0xff] %v477_v0 }
  0x70   : > { %188 = vst [vmem:[%s479_s23 + $0x2c0] sm:$0xff] %v477_v0 }
  0x71   : > { %189 = vst [vmem:[%s479_s23 + $0x2c8] sm:$0xff] %v477_v0 }
  0x72   : > { %190 = vst [vmem:[%s479_s23 + $0x2d0] sm:$0xff] %v477_v0 }
  0x73   : > { %191 = vst [vmem:[%s479_s23 + $0x2d8] sm:$0xff] %v477_v0 }
  0x74   : > { %192 = vst [vmem:[%s479_s23 + $0x2e0] sm:$0xff] %v477_v0 }
  0x75   : > { %193 = vst [vmem:[%s479_s23 + $0x2e8] sm:$0xff] %v477_v0 }
  0x76   : > { %194 = vst [vmem:[%s479_s23 + $0x2f0] sm:$0xff] %v477_v0 }
  0x77   : > { %195 = vst [vmem:[%s479_s23 + $0x2f8] sm:$0xff] %v477_v0 }
  0x78   : > { %196 = vst [vmem:[%s479_s23 + $0x300] sm:$0xff] %v477_v0 }
  0x79   : > { %197 = vst [vmem:[%s479_s23 + $0x308] sm:$0xff] %v477_v0 }
  0x7a   : > { %198 = vst [vmem:[%s479_s23 + $0x310] sm:$0xff] %v477_v0 }
  0x7b   : > { %199 = vst [vmem:[%s479_s23 + $0x318] sm:$0xff] %v477_v0 }
  0x7c   : > { %200 = vst [vmem:[%s479_s23 + $0x320] sm:$0xff] %v477_v0 }
  0x7d   : > { %201 = vst [vmem:[%s479_s23 + $0x328] sm:$0xff] %v477_v0 }
  0x7e   : > { %202 = vst [vmem:[%s479_s23 + $0x330] sm:$0xff] %v477_v0 }
  0x7f   : > { %203 = vst [vmem:[%s479_s23 + $0x338] sm:$0xff] %v477_v0 }
  0x80   : > { %204 = vst [vmem:[%s479_s23 + $0x340] sm:$0xff] %v477_v0 }
  0x81   : > { %205 = vst [vmem:[%s479_s23 + $0x348] sm:$0xff] %v477_v0 }
  0x82   : > { %206 = vst [vmem:[%s479_s23 + $0x350] sm:$0xff] %v477_v0 }
  0x83   : > { %207 = vst [vmem:[%s479_s23 + $0x358] sm:$0xff] %v477_v0 }
  0x84   : > { %208 = vst [vmem:[%s479_s23 + $0x360] sm:$0xff] %v477_v0 }
  0x85   : > { %209 = vst [vmem:[%s479_s23 + $0x368] sm:$0xff] %v477_v0 }
  0x86   : > { %210 = vst [vmem:[%s479_s23 + $0x370] sm:$0xff] %v477_v0 }
  0x87   : > { %211 = vst [vmem:[%s479_s23 + $0x378] sm:$0xff] %v477_v0 }
  0x88   : > { %212 = vst [vmem:[%s479_s23 + $0x380] sm:$0xff] %v477_v0 }
  0x89   : > { %213 = vst [vmem:[%s479_s23 + $0x388] sm:$0xff] %v477_v0 }
  0x8a   : > { %214 = vst [vmem:[%s479_s23 + $0x390] sm:$0xff] %v477_v0 }
  0x8b   : > { %215 = vst [vmem:[%s479_s23 + $0x398] sm:$0xff] %v477_v0 }
  0x8c   : > { %216 = vst [vmem:[%s479_s23 + $0x3a0] sm:$0xff] %v477_v0 }
  0x8d   : > { %217 = vst [vmem:[%s479_s23 + $0x3a8] sm:$0xff] %v477_v0 }
  0x8e   : > { %218 = vst [vmem:[%s479_s23 + $0x3b0] sm:$0xff] %v477_v0 }
  0x8f   : > { %219 = vst [vmem:[%s479_s23 + $0x3b8] sm:$0xff] %v477_v0 }
  0x90   : > { %220 = vst [vmem:[%s479_s23 + $0x3c0] sm:$0xff] %v477_v0 }
  0x91   : > { %221 = vst [vmem:[%s479_s23 + $0x3c8] sm:$0xff] %v477_v0 }
  0x92   : > { %222 = vst [vmem:[%s479_s23 + $0x3d0] sm:$0xff] %v477_v0 }
  0x93   : > { %223 = vst [vmem:[%s479_s23 + $0x3d8] sm:$0xff] %v477_v0 }
  0x94   : > { %224 = vst [vmem:[%s479_s23 + $0x3e0] sm:$0xff] %v477_v0 }
  0x95   : > { %225 = vst [vmem:[%s479_s23 + $0x3e8] sm:$0xff] %v477_v0 }
  0x96   : > { %226 = vst [vmem:[%s479_s23 + $0x3f0] sm:$0xff] %v477_v0 }
  0x97   : > { %227 = vst [vmem:[%s479_s23 + $0x3f8] sm:$0xff] %v477_v0 }
  0x98   : > { %375 = shalt.err (!%p372_p2)
}
  0x99   : > { %s412_s12 = smov 256   ;;  %s413_s14 = smov 16  }
  0x9a   : > { %307 = dma.vmem_to_hbm [thread:$0]  (%p464_p5), %s243_s28, 16384, %s245_s29, %s229_s30, %s412_s12, %s412_s12, %s413_s14  }
  0x9b PF: > { %p313_p3 = scmp.ge.s32.totalorder %s410_s11, 2  ;;  %s259_s15 = sand.u32 1, %s398_s8  }
  0x9c   : > { %s260_s19 = scalar_lea.sflag [#allocation4], %s259_s15 }
  0x9d   : > { %p310_p4 = pnand %p313_p3, %p468_p6 }
  0x9f   : > { %p311_p7 = pneg %p310_p4 }
  0xa1   : > { %393 = dma.done.wait (%p311_p7), %s260_s19, 16384  }
  0xa2   : > { %395 = vsyncadd (%p311_p7), %s260_s19, 4294950912  ;;  %p12_p8 = scmp.ge.s32.totalorder %s450_s13, 4   ;;  %s779_s8 = smov %s402_s9 }
  0xa3   : > { %s780_s9 = smov %s406_s10  ;;  %s781_s10 = smov %s462_s16 }
  0xa4   : > { %s782_s11 = smov %s450_s13  ;;  %14 = sbr.rel (!%p12_p8) target bundleno = 5 (0x5), region = 56 }
  0xa9   :  { %266 = vsyncpa [#allocation4], 1 }
  0xaa   :  { %268 = vsyncpa [#allocation4 + $0x1], 1 }

</bundles_post_ra>
